<compile_context>
chip_gen: v6e
topology: v6e:2x2x1
jax: 0.10.0
libtpu: 0.0.40
codegen_flags: <defaults>
</compile_context>

<pallas_src>
import functools
import math

import jax
import jax.numpy as jnp
from jax import lax
from jax.experimental import pallas as pl
from jax.experimental.pallas import tpu as pltpu

_FINITE_NEG = -3.0e38            # dtype-safe "-inf" sentinel for f32 masking
_VMEM_LIMIT = 48 * 1024 * 1024   # safe on v5e/v6e (128 MiB phys) and v7x (64 MiB)


def _round_up(x, m):
    return ((x + m - 1) // m) * m


# ----------------------------------------------------------------------------
# Kernel 1: row-tiled L2 normalization
# ----------------------------------------------------------------------------
def _l2norm_kernel(x_ref, o_ref):
    x = x_ref[...].astype(jnp.float32)
    ssq = jnp.sum(x * x, axis=-1, keepdims=True)
    o_ref[...] = (x * lax.rsqrt(jnp.maximum(ssq, 1e-24))).astype(o_ref.dtype)


def l2_normalize(x, block_rows=512):
    """Row-wise L2 normalization (== torch.nn.functional.normalize)."""
    n, d = x.shape
    tr = min(block_rows, _round_up(n, 8))
    n_pad = _round_up(n, tr)
    xp = jnp.pad(x, ((0, n_pad - n), (0, 0))) if n_pad != n else x
    out = pl.pallas_call(
        _l2norm_kernel,
        out_shape=jax.ShapeDtypeStruct((n_pad, d), x.dtype),
        grid=(n_pad // tr,),
        in_specs=[pl.BlockSpec((tr, d), lambda i: (i, 0))],
        out_specs=pl.BlockSpec((tr, d), lambda i: (i, 0)),
        compiler_params=pltpu.CompilerParams(
            dimension_semantics=("parallel",),
            vmem_limit_bytes=_VMEM_LIMIT),
    )(xp)
    return out[:n]


# ----------------------------------------------------------------------------
# Kernel 2: tiled A @ B^T on the MXU (bf16 inputs, f32 accumulator, no HBM
# transpose of either operand)
# ----------------------------------------------------------------------------
def _matmul_nt_kernel(a_ref, b_ref, o_ref, acc_ref):
    @pl.when(pl.program_id(2) == 0)
    def _():
        acc_ref[...] = jnp.zeros_like(acc_ref)

    acc_ref[...] += lax.dot_general(
        a_ref[...], b_ref[...],
        dimension_numbers=(((1,), (1,)), ((), ())),   # contract last dims: A @ B^T
        preferred_element_type=jnp.float32)

    @pl.when(pl.program_id(2) == pl.num_programs(2) - 1)
    def _():
        o_ref[...] = acc_ref[...]


def pallas_matmul_nt(a, b, tm=256, tn=256, tk=512):
    """a: (M, D), b: (N, D) -> a @ b.T as (M, N) float32 similarity."""
    m, d = a.shape
    n, d2 = b.shape
    assert d == d2
    tm = min(tm, _round_up(m, 8))
    tn = min(tn, _round_up(n, 128))
    tk = min(tk, _round_up(d, 128))
    mp, np_, dp = _round_up(m, tm), _round_up(n, tn), _round_up(d, tk)
    a_p = jnp.pad(a.astype(jnp.bfloat16), ((0, mp - m), (0, dp - d)))
    b_p = jnp.pad(b.astype(jnp.bfloat16), ((0, np_ - n), (0, dp - d)))
    out = pl.pallas_call(
        _matmul_nt_kernel,
        out_shape=jax.ShapeDtypeStruct((mp, np_), jnp.float32),
        grid=(mp // tm, np_ // tn, dp // tk),
        in_specs=[pl.BlockSpec((tm, tk), lambda i, j, k: (i, k)),
                  pl.BlockSpec((tn, tk), lambda i, j, k: (j, k))],
        out_specs=pl.BlockSpec((tm, tn), lambda i, j, k: (i, j)),
        scratch_shapes=[pltpu.VMEM((tm, tn), jnp.float32)],
        compiler_params=pltpu.CompilerParams(
            dimension_semantics=("parallel", "parallel", "arbitrary"),
            vmem_limit_bytes=_VMEM_LIMIT),
    )(a_p, b_p)
    return out[:m, :n]


# ----------------------------------------------------------------------------
# Kernel 3: fused XBM-bank statistics.
# One pass of feat_q x bank^T tiled over bank columns; label mask, pos-index
# exclusion and all reductions (flash-style online logsumexp, positive
# sum/count, pos/neg maxima, masked negative logsumexp) are fused so no (N,K)
# intermediate ever touches HBM.
# ----------------------------------------------------------------------------
def _bank_stats_kernel(q_ref, bank_ref, qt_ref, bt_ref, bi_ref, pidx_ref,
                       lse_ref, psum_ref, pcnt_ref, pmax_ref, nmax_ref, nlse_ref,
                       m_all, s_all, m_neg, s_neg, psum_s, pcnt_s, pmax_s, nmax_s,
                       *, k_actual, tn, inv_temp):
    j = pl.program_id(1)
    NEG = _FINITE_NEG

    @pl.when(j == 0)
    def _():
        m_all[...] = jnp.full_like(m_all, NEG)
        s_all[...] = jnp.zeros_like(s_all)
        m_neg[...] = jnp.full_like(m_neg, NEG)
        s_neg[...] = jnp.zeros_like(s_neg)
        psum_s[...] = jnp.zeros_like(psum_s)
        pcnt_s[...] = jnp.zeros_like(pcnt_s)
        pmax_s[...] = jnp.full_like(pmax_s, NEG)
        nmax_s[...] = jnp.full_like(nmax_s, NEG)

    # (tm, tn) similarity tile; contraction on the last dims (A @ B^T), bf16 MXU.
    sim = lax.dot_general(q_ref[...], bank_ref[...],
                          dimension_numbers=(((1,), (1,)), ((), ())),
                          preferred_element_type=jnp.float32)
    logits = sim * inv_temp

    col = j * tn + lax.broadcasted_iota(jnp.int32, sim.shape, 1)
    valid = col < k_actual                              # mask padded bank columns
    qt = qt_ref[...]                                    # (tm, 1) int32 main labels
    bt = bt_ref[...]                                    # (1, tn) int32 bank labels
    same = qt == bt
    is_pos = same & valid
    is_neg = valid & jnp.logical_not(same)

    # positive-index exclusion (bank entries listed as positives for this row)
    bi = bi_ref[...]                                    # (1, tn) bank indices
    excl = bi == pidx_ref[:, 0:1]
    for p in range(1, pidx_ref.shape[1]):               # small static unroll
        excl = excl | (bi == pidx_ref[:, p:p + 1])
    spp_neg = is_neg & jnp.logical_not(excl)

    def online_lse(m_ref, s_ref, x):
        m_old = m_ref[...]
        m_new = jnp.maximum(m_old, jnp.max(x, axis=-1, keepdims=True))
        s_ref[...] = (s_ref[...] * jnp.exp(m_old - m_new)
                      + jnp.sum(jnp.exp(x - m_new), axis=-1, keepdims=True))
        m_ref[...] = m_new

    online_lse(m_all, s_all, jnp.where(valid, logits, NEG))     # full logsumexp
    online_lse(m_neg, s_neg, jnp.where(spp_neg, logits, NEG))   # masked logsumexp

    posf = is_pos.astype(jnp.float32)
    psum_s[...] += jnp.sum(posf * logits, axis=-1, keepdims=True)
    pcnt_s[...] += jnp.sum(posf, axis=-1, keepdims=True)
    pmax_s[...] = jnp.maximum(
        pmax_s[...], jnp.max(jnp.where(is_pos, sim, NEG), axis=-1, keepdims=True))
    nmax_s[...] = jnp.maximum(
        nmax_s[...], jnp.max(jnp.where(is_neg, sim, NEG), axis=-1, keepdims=True))

    @pl.when(j == pl.num_programs(1) - 1)
    def _():
        lse_ref[...] = m_all[...] + jnp.log(s_all[...])
        psum_ref[...] = psum_s[...]
        pcnt_ref[...] = pcnt_s[...]
        pmax_ref[...] = pmax_s[...]
        nmax_ref[...] = nmax_s[...]
        nlse_ref[...] = m_neg[...] + jnp.log(s_neg[...])


def bank_statistics(feat_q, main_targets, bank_feats, bank_targets,
                    bank_indices, pos_indices_rows, temp=0.1, tm=256, tn=512):
    """Per-row stats of feat_q against the bank: (lse, pos_sum, pos_cnt,
    pos_max, neg_max, masked_neg_lse), each shape (N,)."""
    n, d = feat_q.shape
    k = bank_feats.shape[0]
    p = pos_indices_rows.shape[1]
    tm = min(tm, _round_up(n, 8))
    tn = min(tn, _round_up(k, 128))
    n_pad = _round_up(n, tm)
    k_pad = _round_up(k, tn)

    q_p = jnp.pad(feat_q.astype(jnp.bfloat16), ((0, n_pad - n), (0, 0)))
    b_p = jnp.pad(bank_feats.astype(jnp.bfloat16), ((0, k_pad - k), (0, 0)))
    qt_p = jnp.pad(main_targets.astype(jnp.int32).reshape(n, 1),
                   ((0, n_pad - n), (0, 0)), constant_values=-1)
    bt_p = jnp.pad(bank_targets.astype(jnp.int32).reshape(1, k),
                   ((0, 0), (0, k_pad - k)), constant_values=-2)
    bi_p = jnp.pad(bank_indices.astype(jnp.int32).reshape(1, k),
                   ((0, 0), (0, k_pad - k)), constant_values=-2)
    pi_p = jnp.pad(pos_indices_rows.astype(jnp.int32),
                   ((0, n_pad - n), (0, 0)), constant_values=-1)

    row_spec = pl.BlockSpec((tm, 1), lambda i, j: (i, 0))
    outs = pl.pallas_call(
        functools.partial(_bank_stats_kernel,
                          k_actual=k, tn=tn, inv_temp=float(1.0 / temp)),
        out_shape=[jax.ShapeDtypeStruct((n_pad, 1), jnp.float32)
                   for _ in range(6)],
        grid=(n_pad // tm, k_pad // tn),
        in_specs=[
            pl.BlockSpec((tm, d), lambda i, j: (i, 0)),    # query features
            pl.BlockSpec((tn, d), lambda i, j: (j, 0)),    # bank features
            pl.BlockSpec((tm, 1), lambda i, j: (i, 0)),    # query main labels
            pl.BlockSpec((1, tn), lambda i, j: (0, j)),    # bank main labels
            pl.BlockSpec((1, tn), lambda i, j: (0, j)),    # bank indices
            pl.BlockSpec((tm, p), lambda i, j: (i, 0)),    # pos-index lists
        ],
        out_specs=[row_spec] * 6,
        scratch_shapes=[pltpu.VMEM((tm, 1), jnp.float32) for _ in range(8)],
        compiler_params=pltpu.CompilerParams(
            dimension_semantics=("parallel", "arbitrary"),
            vmem_limit_bytes=_VMEM_LIMIT),
    )(q_p, b_p, qt_p, bt_p, bi_p, pi_p)
    lse, psum, pcnt, pmax, nmax, nlse = outs
    sl = slice(0, n)
    return (lse[sl, 0], psum[sl, 0], pcnt[sl, 0],
            pmax[sl, 0], nmax[sl, 0], nlse[sl, 0])


# ----------------------------------------------------------------------------
# Surrogate sub-losses (originals resolved via sgps.find(cfg.*); unavailable).
# ----------------------------------------------------------------------------
def clean_batch_loss(feat, tgt, weights):
    # TODO(synk): real loss = sgps.find(cfg.clean_batch_loss); the PyTorch
    # dynamic boolean selection feat[p_in] is replaced by pair weighting.
    sim = pallas_matmul_nt(feat, feat)                    # (N, N) tiled MXU
    n = feat.shape[0]
    same = (tgt[:, None] == tgt[None, :]).astype(jnp.float32)
    eye = jnp.eye(n, dtype=jnp.float32)
    pos = same * (1.0 - eye)
    neg = 1.0 - same
    pw = weights[:, None] * weights[None, :]
    pos_loss = jnp.sum(pw * pos * (1.0 - sim)) / jnp.maximum(jnp.sum(pw * pos), 1e-6)
    neg_loss = jnp.sum(pw * neg * jnp.maximum(sim, 0.0)) / jnp.maximum(jnp.sum(pw * neg), 1e-6)
    return pos_loss + neg_loss


def cal_neg_mask(query_label, sub_label):
    """Bool (B, B*(G-1)) mask: different main, bt and tb labels (columns 0,1,3)."""
    q = query_label.reshape(-1, query_label.shape[-1]).astype(jnp.int32)
    k = sub_label.reshape(-1, sub_label.shape[-1]).astype(jnp.int32)
    mask_main = q[:, 0][:, None] != k[:, 0][None, :]
    mask_bt = q[:, 1][:, None] != k[:, 1][None, :]
    mask_tb = q[:, 3][:, None] != k[:, 3][None, :]
    return mask_main & mask_bt & mask_tb


def _hinge_spp(pos_term, neg_term, keep_bool, margin=0.1):
    # TODO(synk): real loss = sgps.find(cfg.noise_sgps_loss); attention-weighted
    # positive vs masked-negative hinge surrogate.
    keep = keep_bool.astype(jnp.float32)
    per_sample = jnp.maximum(neg_term - pos_term + margin, 0.0)
    return jnp.sum(keep * per_sample) / jnp.maximum(jnp.sum(keep), 1e-6)


# ----------------------------------------------------------------------------
# NoiseFreeLoss.forward
# ----------------------------------------------------------------------------
def noisefree_loss_forward(feat_q, targets, indices, pos_indices_padded,
                           xbm_feats, xbm_targets, xbm_indices, attn_w, cfg,
                           temp=0.1):
    B = cfg["batch_size"]
    D = cfg["feature_dim"]
    L = cfg["group_num"]
    N = feat_q.shape[0]
    G = N // B                                           # group_size

    feat_q = l2_normalize(feat_q)                        # Pallas (row-tiled)
    feat_q_r = feat_q.reshape(B, G, D)
    targets_r = targets.reshape(B, G, L)
    _ = indices.reshape(B, G)                            # bookkeeping only

    feat_query = feat_q_r[:, 0]                          # (B, D)
    feat_sub = feat_q_r[:, 1:]                           # (B, G-1, D)
    query_label = targets_r[:, 0:1]                      # (B, 1, L)
    sub_label = targets_r[:, 1:]                         # (B, G-1, L)
    main_targets = targets_r[:, :, 0].astype(jnp.int32).reshape(-1)
    query_label_target = query_label[:, :, 0].astype(jnp.int32).reshape(-1)

    # TODO(synk): XBM enqueue_dequeue is stateful cross-step memory; bank
    # contents are supplied as deterministic inputs here.
    if pos_indices_padded is None:
        pos_rows = jnp.full((N, 1), -1, jnp.int32)
    else:
        pos_rows = jnp.repeat(pos_indices_padded.astype(jnp.int32), G, axis=0)

    # --- single fused pass over the bank (similarity computed exactly once) ---
    lse, psum, pcnt, pmax, nmax, nlse = bank_statistics(
        feat_q, main_targets, xbm_feats, xbm_targets, xbm_indices, pos_rows,
        temp=temp)

    # clean bank loss (all rows) and its query-row restriction come from the
    # same per-row statistics (query rows are the strided slice 0::G).
    # TODO(synk): real loss = sgps.find(cfg.clean_bank_loss); bank-contrastive
    # surrogate on the fused statistics.
    pos_term_bank = psum / jnp.maximum(pcnt, 1.0)
    per_row = lse - pos_term_bank
    p_in = pmax >= nmax
    xbm_loss = jnp.mean(per_row)
    xbm_loss_query = jnp.mean(per_row[0::G])
    p_in_query = p_in[0::G]

    batch_loss = clean_batch_loss(feat_q, main_targets, p_in.astype(jnp.float32))
    batch_loss_query = clean_batch_loss(
        feat_query, query_label_target, p_in_query.astype(jnp.float32))

    loss_pr_query = (batch_loss_query * cfg["lambda_clean_batch"] +
                     xbm_loss_query * cfg["lambda_clean_bank"])
    loss_pr_all = (batch_loss * cfg["lambda_clean_batch"] +
                   xbm_loss * cfg["lambda_clean_bank"])

    keep_bool = p_in.reshape(B, G)[:, 0]

    # attention module surrogate: only column 0 of attn_w is consumed, so use a
    # VPU broadcast-multiply + reduce instead of an MXU projection.
    # TODO(synk): real module = sgps.find(cfg.attention_module).
    scores = jnp.sum(feat_sub * attn_w[:, 0][None, None, :], axis=-1)   # (B, G-1)
    attention_mask = jax.nn.softmax(scores, axis=1)

    # positive term: per-pair dot products (VPU reduce, no matmul + gather)
    pos_sim = jnp.sum(feat_query[:, None, :] * feat_sub, axis=-1)       # (B, G-1)
    pos_term = jnp.sum(attention_mask * pos_sim, axis=1)                # (B,)

    # in-batch negatives: tiled MXU matmul + jnp bool mask + logsumexp
    sub_flat = feat_sub.reshape(B * (G - 1), D)
    neg_sim = pallas_matmul_nt(feat_query, sub_flat)                    # (B, B*(G-1))
    mask_neg = cal_neg_mask(query_label, sub_label)
    neg_logits = jnp.where(mask_neg, neg_sim / temp, _FINITE_NEG)
    neg_term_batch = jax.scipy.special.logsumexp(neg_logits, axis=1) * temp

    # bank negatives: masked online logsumexp already produced by the fused kernel
    neg_term_bank = nlse[0::G] * temp

    loss_spp = _hinge_spp(pos_term, neg_term_batch, keep_bool)
    loss_spp_bank = _hinge_spp(pos_term, neg_term_bank, keep_bool)

    nan_flag = jnp.isnan(loss_spp) | jnp.isnan(loss_spp_bank)
    loss_spp = jnp.where(nan_flag, 0.0, loss_spp)
    loss_spp_bank = jnp.where(nan_flag, 0.0, loss_spp_bank)

    loss_all = (loss_pr_query * cfg["lambda_clean_query"] +
                loss_pr_all * cfg["lambda_clean_all"] +
                loss_spp * cfg["lambda_noise_batch"] +
                loss_spp_bank * cfg["lambda_noise_bank"])
    return loss_all


# ----------------------------------------------------------------------------
if __name__ == "__main__":
    cfg = dict(
        batch_size=2, group_size=4, feature_dim=32, group_num=5, bank_size=16,
        lambda_clean_batch=1.0, lambda_clean_bank=1.0,
        lambda_clean_query=0.5, lambda_clean_all=0.5,
        lambda_noise_batch=0.1, lambda_noise_bank=0.1,
    )
    N = cfg["batch_size"] * cfg["group_size"]
    D = cfg["feature_dim"]
    K = cfg["bank_size"]

    key = jax.random.PRNGKey(0)
    k1, k2, k3, k4 = jax.random.split(key, 4)

    feat_q = jax.random.normal(k1, (N, D), jnp.float32)
    targets = jax.random.randint(k2, (N, cfg["group_num"]), 0, 4, jnp.int32)
    indices = jnp.arange(N, dtype=jnp.int32)
    # per-query positive bank indices, padded with -1
    pos_indices = jnp.array([[100, 103, -1, -1],
                             [105, -1, -1, -1]], dtype=jnp.int32)

    # Emulated XBM bank contents (deterministic).
    xbm_feats = l2_normalize(jax.random.normal(k3, (K, D), jnp.float32))
    xbm_targets = jax.random.randint(k4, (K,), 0, 4, jnp.int32)
    xbm_indices = jnp.arange(100, 100 + K, dtype=jnp.int32)

    # Deterministic attention projection weights (D, 8); column 0 is used.
    attn_w = (jnp.sin(jnp.arange(D * 8, dtype=jnp.float32)).reshape(D, 8)
              / math.sqrt(D))

    loss = noisefree_loss_forward(feat_q, targets, indices, pos_indices,
                                  xbm_feats, xbm_targets, xbm_indices,
                                  attn_w, cfg)
    loss = jax.block_until_ready(loss)
    assert loss.shape == () and jnp.isfinite(loss)
    print("KERNEL_OK")
</pallas_src>

<mosaic_0001>
module attributes {stable_mosaic.version = 11 : i64} {
  func.func @_l2norm_kernel(%arg0: i32, %arg1: memref<16x32xf32, #tpu.memory_space<vmem>>, %arg2: memref<16x32xf32, #tpu.memory_space<vmem>>) attributes {dimension_semantics = [#tpu.dimension_semantics<parallel>], iteration_bounds = array<i64: 1>, scalar_prefetch = 0 : i64, scratch_operands = 0 : i64, tpu.core_type = #tpu.core_type<tc>, window_params = [{transform_indices = @transform_0, window_bounds = array<i64: 16, 32>}, {transform_indices = @transform_1, window_bounds = array<i64: 16, 32>}]} {
    %c0 = arith.constant 0 : index
    %c0_0 = arith.constant 0 : index
    %0 = vector.load %arg1[%c0, %c0_0] : memref<16x32xf32, #tpu.memory_space<vmem>>, vector<16x32xf32>
    %1 = arith.mulf %0, %0 : vector<16x32xf32>
    %cst = arith.constant dense<0.000000e+00> : vector<16xf32>
    %2 = vector.multi_reduction <add>, %1, %cst [1] : vector<16x32xf32> to vector<16xf32>
    %3 = vector.shape_cast %2 : vector<16xf32> to vector<16x1xf32>
    %cst_1 = arith.constant 1.000000e-24 : f32
    %4 = vector.broadcast %cst_1 : f32 to vector<16x1xf32>
    %5 = arith.maximumf %3, %4 : vector<16x1xf32>
    %6 = math.rsqrt %5 : vector<16x1xf32>
    %7 = vector.broadcast %6 : vector<16x1xf32> to vector<16x32xf32>
    %8 = arith.mulf %0, %7 : vector<16x32xf32>
    %c0_2 = arith.constant 0 : index
    %c0_3 = arith.constant 0 : index
    %9 = vector.load %arg2[%c0_2, %c0_3] : memref<16x32xf32, #tpu.memory_space<vmem>>, vector<16x32xf32>
    tpu.vector_store %arg2[%c0_2, %c0_3], %8 {strides = array<i32>} : memref<16x32xf32, #tpu.memory_space<vmem>>, vector<16x32xf32>,
    return
  }
  func.func @transform_0(%arg0: i32) -> (i32, i32) {
    %c0_i32 = arith.constant 0 : i32
    %c0_i32_0 = arith.constant 0 : i32
    return %arg0, %c0_i32 : i32, i32
  }
  func.func @transform_1(%arg0: i32) -> (i32, i32) {
    %c0_i32 = arith.constant 0 : i32
    %c0_i32_0 = arith.constant 0 : i32
    return %arg0, %c0_i32 : i32, i32
  }
}

</mosaic_0001>

<bundles_post_ra>
// kernel: tpu_custom_call.1
= control target key start
LH: loop header
LB: loop body
LE: loop exit
PB: predicated region body
PF: predicated region fallthrough
CT: control target
= control target key end

     0   :  { %6 = vsyncpa [#allocation3], 0  ;;  %s141_s0 = inlined_call_operand.hbm [shape: f32[16,32], index: 0, kind: input, shape index: {}]   ;;  %s142_s1 = inlined_call_operand.hbm [shape: f32[16,32], index: 1, kind: output, shape index: {}]  }
   0x1   :  { %7 = vsyncpa [#allocation4], 0  ;;  %s111_s6 = smov [#allocation2]  }
   0x2   :  { %s13_s7 = sshll.u32 %s111_s6, 4  ;;  %s14_s7 = int_to_ptr.vmem [resolvable:$true] %s13_s7 }
   0x3   :  { %s75_s8 = scalar_lea.vmem %s14_s7, 256  ;;  %p80_p1 = scmp.lt.s32.totalorder %s14_s7, %s14_s7 }
   0x4   :  { %p76_p0 = scmp.ne.s32.totalorder %s14_s7, %s75_s8  ;;  %p81_p2 = scmp.lt.s32.totalorder %s75_s8, %s75_s8 }
   0x6   :  { %p82_p3 = por %p81_p2, %p80_p1 }
   0x8   :  { %p83_p4 = pnand %p82_p3, %p76_p0 }
   0xa   :  { %86 = shalt.err (!%p83_p4)
}
   0xb   :  { %s112_s9 = smov 128   ;;  %s113_s10 = smov 8  }
   0xc   :  { %19 = dma.hbm_to_vmem [thread:$0]  %s141_s0, 256, %s14_s7, [#allocation3], %s112_s9, %s112_s9, %s113_s10  }
   0xd   :  { %107 = dma.done.wait [#allocation3], 256  }
   0xe   :  { %108 = vsyncadd [#allocation3], 4294967040  ;;  %v23_v0 = vld [vmem:[#allocation2] sm:$0xff]  ;;  %vm27_vm0 = vcmask 261120   ;;  %v24_v1 = vld [vmem:[#allocation2 + $0x8] sm:$0xff]  ;;  %s114_s0 = smov [#allocation5]  }
   0xf   :  { %v25_v2 = vmul.f32 %v23_v0, %v23_v0  ;;  %v26_v3 = vmul.f32 %v24_v1, %v24_v1  ;;  %s47_s13 = sshll.u32 %s114_s0, 4  ;;  %s48_s13 = int_to_ptr.vmem [resolvable:$true] %s47_s13 }
  0x10   :  { %s87_s14 = scalar_lea.vmem %s48_s13, 256  ;;  %p92_p6 = scmp.lt.s32.totalorder %s48_s13, %s48_s13 }
  0x11   :  { %v28_v4 = vsel %vm27_vm0, %v25_v2, 0.0  ;;  %v31_v5 = vsel %vm27_vm0, %v26_v3, 0.0  ;;  %p88_p5 = scmp.ne.s32.totalorder %s48_s13, %s87_s14  ;;  %p93_p7 = scmp.lt.s32.totalorder %s87_s14, %s87_s14 }
  0x12   :  { %29 = vadd.xlane.f32.xlu0 %v28_v4 }
  0x13   :  { %p94_p8 = por %p93_p7, %p92_p6 }
  0x15   :  { %p95_p9 = pnand %p94_p8, %p88_p5 }
  0x16   :  { %32 = vadd.xlane.f32.xlu0 %v31_v5 }
  0x9b   :  { %v30_v6 = vpop.xlane.xlu0 %29 }
  0x9c   :  { %v34_v7 = vmax.f32 %v30_v6, 1e-24 }
  0x9e   :  { %63 = vrsqrt.f32 %v34_v7 }
  0x9f   :  { %v33_v8 = vpop.xlane.xlu0 %32 }
  0xa0   :  { %v35_v9 = vmax.f32 %v33_v8, 1e-24 }
  0xa2   :  { %65 = vrsqrt.f32 %v35_v9 }
  0xab   :  { %v64_v10 = vpop.eup %63 }
  0xac   :  { %v38_v11 = vmul.f32 %v64_v10, %v23_v0 }
  0xae   :  { %40 = vst.msk [vmem:[#allocation5] sm:$0xff] %vm27_vm0, %v38_v11 }
  0xaf   :  { %v66_v12 = vpop.eup %65 }
  0xb0   :  { %v39_v13 = vmul.f32 %v66_v12, %v24_v1 }
  0xb2   :  { %41 = vst.msk [vmem:[#allocation5 + $0x8] sm:$0xff] %vm27_vm0, %v39_v13 }
  0xb3   :  { %98 = shalt.err (!%p95_p9)
}
  0xb4   :  { %53 = dma.vmem_to_hbm [thread:$0]  %s48_s13, 256, %s142_s1, [#allocation4], %s112_s9, %s112_s9, %s113_s10  }
  0xb5   :  { %109 = dma.done.wait [#allocation4], 256  }
  0xb6   :  { %110 = vsyncadd [#allocation4], 4294967040 }
  0xb7   :  { %57 = vsyncpa [#allocation3], 1 }
  0xb8   :  { %58 = vsyncpa [#allocation4], 1 }

</bundles_post_ra>
